<compile_context>
chip_gen: v5e
topology: v5e:2x2
jax: 0.10.0
libtpu: 0.0.40
codegen_flags: <defaults>
</compile_context>

<pallas_src>
import jax
import jax.numpy as jnp
from jax.experimental import pallas as pl
from jax.experimental.pallas import tpu as pltpu


def _round_up(n: int, m: int) -> int:
    return ((n + m - 1) // m) * m


def _supports_pipeline_mode() -> bool:
    """True if this JAX build exposes pl.Buffered + BlockSpec(pipeline_mode=...)."""
    if not hasattr(pl, "Buffered"):
        return False
    try:
        pl.BlockSpec((8, 128), lambda i: (0, 0), pipeline_mode=pl.Buffered(1))
        return True
    except Exception:
        return False


_HAS_PIPELINE_MODE = _supports_pipeline_mode()


def _make_kernel(out_valid: int, out_padded: int, approx_recip: bool):
    """Fused 3-layer MLP + softmax for one batch tile."""
    needs_mask = out_valid < out_padded

    def kernel(x_ref, w1_ref, b1_ref, w2_ref, b2_ref, w3_ref, b3_ref, o_ref):
        # Layer 1: matmul in operand dtype (bf16 or f32), accumulate in f32 (MXU).
        h = jnp.dot(x_ref[...], w1_ref[...], preferred_element_type=jnp.float32)
        h = jnp.maximum(h + b1_ref[...], 0.0)          # bias/ReLU in f32 (VPU)

        # Layer 2.
        h = jnp.dot(h.astype(w2_ref.dtype), w2_ref[...],
                    preferred_element_type=jnp.float32)
        h = jnp.maximum(h + b2_ref[...], 0.0)

        # Layer 3 (+ReLU, as in the PyTorch module).
        h = jnp.dot(h.astype(w3_ref.dtype), w3_ref[...],
                    preferred_element_type=jnp.float32)
        h = jnp.maximum(h + b3_ref[...], 0.0)

        # Mask padded output columns to -inf so they don't enter the softmax.
        if needs_mask:
            col = jax.lax.broadcasted_iota(jnp.int32, h.shape, 1)
            h = jnp.where(col < out_valid, h, -jnp.inf)

        # Softmax over the last axis (== dim=1 of the 2-D input).
        m = jnp.max(h, axis=-1, keepdims=True)          # XLU
        e = jnp.exp(h - m)                              # EUP
        denom = jnp.sum(e, axis=-1, keepdims=True)      # XLU
        inv = pl.reciprocal(denom, approx=approx_recip)  # EUP slot
        o_ref[...] = (e * inv).astype(o_ref.dtype)

    return kernel


def _vmem_need_bytes(bm, K, H, N, op_bytes, out_bytes, weight_buffers, io_buffers):
    """Rough VMEM budget: resident weights/biases + pipelined x/out + f32 activations."""
    weights = weight_buffers * (K * H + H * H + H * N) * op_bytes
    biases = weight_buffers * 8 * (H + H + N) * 4       # sublane-padded f32 rows
    x_buf = io_buffers * bm * K * op_bytes
    o_buf = io_buffers * bm * N * out_bytes
    act = 2 * bm * H * 4                                # live f32 hidden activations
    return weights + biases + x_buf + o_buf + act


def _choose_bm(B, candidates, fits):
    """Pick the batch tile minimizing padding waste, preferring >=2 grid steps
    (keeps both v7x TensorCores busy) and larger tiles to amortize per-step overhead."""
    cap = _round_up(max(B, 1), 16)                      # sublane-safe for f32 & bf16
    best = None
    for c in sorted({min(_round_up(int(c), 16), cap) for c in candidates}):
        if c <= 0 or not fits(c):
            continue
        Bp = _round_up(B, c)
        grid = Bp // c
        key = (Bp - B, 0 if grid >= 2 else 1, -c)
        if best is None or key < best[0]:
            best = (key, c)
    if best is None:
        # TODO(synk): fall back to a K/N-tiled per-layer matmul when resident
        # weights exceed the VMEM budget (needed only for very large hidden sizes).
        raise ValueError("No batch tile fits the VMEM budget; hidden size too "
                         "large for the weight-resident design.")
    return best[1]


def prepare_params(w1, b1, w2, b2, w3, b3, *, operand_dtype=jnp.bfloat16):
    """Pad feature dims to lane multiples (128) and cast weights ONCE (hoisted out
    of the per-call path so weights aren't re-read/re-written in HBM every forward).

    w*: [in, out] (transposed vs. PyTorch's [out, in]); b*: [1, out].
    bf16 operands are the default (f32 accumulation happens in-kernel).
    """
    in_size, hidden = w1.shape
    out_size = w3.shape[1]
    K = _round_up(in_size, 128)
    H = _round_up(hidden, 128)
    N = _round_up(out_size, 128)

    def pad2(a, rows, cols, dtype):
        a = a.astype(dtype)
        return jnp.pad(a, ((0, rows - a.shape[0]), (0, cols - a.shape[1])))

    return {
        "w1": pad2(w1, K, H, operand_dtype), "b1": pad2(b1, 1, H, jnp.float32),
        "w2": pad2(w2, H, H, operand_dtype), "b2": pad2(b2, 1, H, jnp.float32),
        "w3": pad2(w3, H, N, operand_dtype), "b3": pad2(b3, 1, N, jnp.float32),
        "dims": (in_size, hidden, out_size),
        "padded_dims": (K, H, N),
        "operand_dtype": operand_dtype,
    }


def three_layer_perceptron(x, prepared, *, block_m_candidates=(128, 256, 512),
                           io_buffers=2, single_buffer_weights=True,
                           vmem_budget_bytes=40 << 20):
    """x: [B, input_size]; prepared: output of prepare_params. Returns [B, output_size].

    io_buffers: pipelining depth for the x/out streams (raise to 3 if profiling
    shows exposed DMA for small-hidden configs; weights always stay at 1 buffer).
    Note: the single-buffer fallback path only triggers when called eagerly
    (under an outer jax.jit, Mosaic compile errors surface at jit compile time).
    """
    in_size, hidden, out_size = prepared["dims"]
    K, H, N = prepared["padded_dims"]
    op_dtype = prepared["operand_dtype"]
    out_dtype = x.dtype
    B = x.shape[0]
    assert x.shape[1] == in_size, "x feature dim does not match prepared params"

    op_bytes = jnp.dtype(op_dtype).itemsize
    out_bytes = jnp.dtype(out_dtype).itemsize
    wbuf = 1 if (single_buffer_weights and _HAS_PIPELINE_MODE) else 2

    fits = lambda bm: _vmem_need_bytes(bm, K, H, N, op_bytes, out_bytes,
                                       wbuf, io_buffers) <= vmem_budget_bytes
    bm = _choose_bm(B, block_m_candidates, fits)
    Bp = _round_up(B, bm)

    # Per-call padding/casting is only needed for x (weights were prepared once).
    xp = jnp.pad(x.astype(op_dtype), ((0, Bp - B), (0, K - in_size)))

    kernel = _make_kernel(
        out_size, N,
        approx_recip=(jnp.dtype(op_dtype) != jnp.dtype(jnp.float32)))

    x_idx = lambda i: (i, 0)
    res_idx = lambda i: (0, 0)

    def build(use_pipeline_mode: bool):
        wbuf_local = 1 if (use_pipeline_mode and single_buffer_weights) else 2

        def spec(shape, idx, count=None):
            if use_pipeline_mode and count is not None and count != 2:
                return pl.BlockSpec(shape, idx, pipeline_mode=pl.Buffered(count))
            return pl.BlockSpec(shape, idx)

        # Weights/biases stay VMEM-resident across the whole batch grid.
        resident = lambda shape: spec(
            shape, res_idx, 1 if single_buffer_weights else None)

        need = _vmem_need_bytes(bm, K, H, N, op_bytes, out_bytes,
                                wbuf_local, io_buffers)
        vmem_limit = int(min(max(need * 5 // 4 + (1 << 20), 16 << 20), 64 << 20))

        return pl.pallas_call(
            kernel,
            out_shape=jax.ShapeDtypeStruct((Bp, N), out_dtype),
            grid_spec=pltpu.PrefetchScalarGridSpec(
                num_scalar_prefetch=0,
                grid=(Bp // bm,),
                in_specs=[
                    spec((bm, K), x_idx, io_buffers),   # x tile (pipelined)
                    resident((K, H)), resident((1, H)),
                    resident((H, H)), resident((1, H)),
                    resident((H, N)), resident((1, N)),
                ],
                out_specs=spec((bm, N), x_idx, io_buffers),
            ),
            compiler_params=pltpu.CompilerParams(
                dimension_semantics=("parallel",),      # shard batch across TCs on v7x
                vmem_limit_bytes=vmem_limit,
            ),
        )

    args = (xp, prepared["w1"], prepared["b1"], prepared["w2"], prepared["b2"],
            prepared["w3"], prepared["b3"])

    wants_pipeline_mode = _HAS_PIPELINE_MODE and (single_buffer_weights
                                                  or io_buffers != 2)
    if wants_pipeline_mode:
        try:
            out_p = build(True)(*args)
        except Exception:
            # Safety net for builds that accept the pipeline_mode kwarg but reject
            # single-buffered specs at Mosaic compile time: correctness first.
            out_p = build(False)(*args)
    else:
        out_p = build(False)(*args)

    return out_p[:B, :out_size]


def init_params(key, input_size, hidden_size, output_size, dtype=jnp.float32):
    """Deterministic synthetic init (PyTorch-Linear-style uniform bounds)."""
    ks = jax.random.split(key, 6)

    def linear(kw, kb, fan_in, fan_out):
        bound = 1.0 / jnp.sqrt(fan_in)
        # Stored as [in, out] (transposed vs. PyTorch's [out, in]).
        w = jax.random.uniform(kw, (fan_in, fan_out), dtype, -bound, bound)
        b = jax.random.uniform(kb, (1, fan_out), dtype, -bound, bound)
        return w, b

    w1, b1 = linear(ks[0], ks[1], input_size, hidden_size)
    w2, b2 = linear(ks[2], ks[3], hidden_size, hidden_size)
    w3, b3 = linear(ks[4], ks[5], hidden_size, output_size)
    return w1, b1, w2, b2, w3, b3


if __name__ == "__main__":
    input_size, hidden_size, output_size = 16, 32, 8
    batch = 2

    key = jax.random.PRNGKey(0)
    k_x, k_p = jax.random.split(key)

    x = jax.random.normal(k_x, (batch, input_size), jnp.float32)
    params = init_params(k_p, input_size, hidden_size, output_size)

    # Weights padded/cast exactly once (hoisted out of the per-forward path).
    prepared_bf16 = prepare_params(*params)                         # default bf16 operands
    prepared_f32 = prepare_params(*params, operand_dtype=jnp.float32)

    # bf16-operand / f32-accumulate path (default; MXU-friendly on all gens).
    out_bf16 = three_layer_perceptron(x, prepared_bf16)
    jax.block_until_ready(out_bf16)

    # Full-f32 path (tight correctness check; exact reciprocal in the softmax).
    out_f32 = three_layer_perceptron(x, prepared_f32)
    jax.block_until_ready(out_f32)

    # Pure-JAX reference (matches the PyTorch forward: 3x Linear+ReLU, softmax dim=1).
    w1, b1, w2, b2, w3, b3 = params
    h = jnp.maximum(x @ w1 + b1, 0.0)
    h = jnp.maximum(h @ w2 + b2, 0.0)
    h = jnp.maximum(h @ w3 + b3, 0.0)
    ref = jax.nn.softmax(h, axis=1)

    assert out_f32.shape == (batch, output_size)
    assert out_bf16.shape == (batch, output_size)
    assert jnp.allclose(out_f32, ref, atol=5e-3), "f32 path mismatch vs reference"
    assert jnp.allclose(out_bf16, ref, atol=5e-2), "bf16 path mismatch vs reference"

    print("KERNEL_OK")
</pallas_src>

<mosaic_0001>
module attributes {stable_mosaic.version = 11 : i64} {
  func.func @kernel(%arg0: i32, %arg1: memref<16x128xbf16, #tpu.memory_space<vmem>>, %arg2: memref<128x128xbf16, #tpu.memory_space<vmem>>, %arg3: memref<1x128xf32, #tpu.memory_space<vmem>>, %arg4: memref<128x128xbf16, #tpu.memory_space<vmem>>, %arg5: memref<1x128xf32, #tpu.memory_space<vmem>>, %arg6: memref<128x128xbf16, #tpu.memory_space<vmem>>, %arg7: memref<1x128xf32, #tpu.memory_space<vmem>>, %arg8: memref<16x128xf32, #tpu.memory_space<vmem>>) attributes {dimension_semantics = [#tpu.dimension_semantics<parallel>], iteration_bounds = array<i64: 1>, scalar_prefetch = 0 : i64, scratch_operands = 0 : i64, tpu.core_type = #tpu.core_type<tc>, window_params = [{transform_indices = @transform_0, window_bounds = array<i64: 16, 128>}, {pipeline_mode = #tpu.pipeline_mode<synchronous>, transform_indices = @transform_1, window_bounds = array<i64: 128, 128>}, {pipeline_mode = #tpu.pipeline_mode<synchronous>, transform_indices = @transform_2, window_bounds = array<i64: 1, 128>}, {pipeline_mode = #tpu.pipeline_mode<synchronous>, transform_indices = @transform_3, window_bounds = array<i64: 128, 128>}, {pipeline_mode = #tpu.pipeline_mode<synchronous>, transform_indices = @transform_4, window_bounds = array<i64: 1, 128>}, {pipeline_mode = #tpu.pipeline_mode<synchronous>, transform_indices = @transform_5, window_bounds = array<i64: 128, 128>}, {pipeline_mode = #tpu.pipeline_mode<synchronous>, transform_indices = @transform_6, window_bounds = array<i64: 1, 128>}, {transform_indices = @transform_7, window_bounds = array<i64: 16, 128>}]} {
    %c0 = arith.constant 0 : index
    %c0_0 = arith.constant 0 : index
    %0 = vector.load %arg1[%c0, %c0_0] : memref<16x128xbf16, #tpu.memory_space<vmem>>, vector<16x128xbf16>
    %c0_1 = arith.constant 0 : index
    %c0_2 = arith.constant 0 : index
    %1 = vector.load %arg2[%c0_1, %c0_2] : memref<128x128xbf16, #tpu.memory_space<vmem>>, vector<128x128xbf16>
    %cst = arith.constant dense<0.000000e+00> : vector<16x128xf32>
    %2 = tpu.matmul %0, %1, %cst {dimension_numbers = #tpu.dot_dimension_numbers<[1], [0], [0], [1], [0, 0, 1, 1], [], []>} : vector<16x128xbf16>, vector<128x128xbf16>, vector<16x128xf32> -> vector<16x128xf32>
    %c0_3 = arith.constant 0 : index
    %c0_4 = arith.constant 0 : index
    %3 = vector.load %arg3[%c0_3, %c0_4] : memref<1x128xf32, #tpu.memory_space<vmem>>, vector<1x128xf32>
    %4 = vector.broadcast %3 : vector<1x128xf32> to vector<16x128xf32>
    %5 = arith.addf %2, %4 : vector<16x128xf32>
    %cst_5 = arith.constant 0.000000e+00 : f32
    %6 = vector.broadcast %cst_5 : f32 to vector<16x128xf32>
    %7 = arith.maximumf %5, %6 : vector<16x128xf32>
    %8 = arith.truncf %7 : vector<16x128xf32> to vector<16x128xbf16>
    %c0_6 = arith.constant 0 : index
    %c0_7 = arith.constant 0 : index
    %9 = vector.load %arg4[%c0_6, %c0_7] : memref<128x128xbf16, #tpu.memory_space<vmem>>, vector<128x128xbf16>
    %cst_8 = arith.constant dense<0.000000e+00> : vector<16x128xf32>
    %10 = tpu.matmul %8, %9, %cst_8 {dimension_numbers = #tpu.dot_dimension_numbers<[1], [0], [0], [1], [0, 0, 1, 1], [], []>} : vector<16x128xbf16>, vector<128x128xbf16>, vector<16x128xf32> -> vector<16x128xf32>
    %c0_9 = arith.constant 0 : index
    %c0_10 = arith.constant 0 : index
    %11 = vector.load %arg5[%c0_9, %c0_10] : memref<1x128xf32, #tpu.memory_space<vmem>>, vector<1x128xf32>
    %12 = vector.broadcast %11 : vector<1x128xf32> to vector<16x128xf32>
    %13 = arith.addf %10, %12 : vector<16x128xf32>
    %cst_11 = arith.constant 0.000000e+00 : f32
    %14 = vector.broadcast %cst_11 : f32 to vector<16x128xf32>
    %15 = arith.maximumf %13, %14 : vector<16x128xf32>
    %16 = arith.truncf %15 : vector<16x128xf32> to vector<16x128xbf16>
    %c0_12 = arith.constant 0 : index
    %c0_13 = arith.constant 0 : index
    %17 = vector.load %arg6[%c0_12, %c0_13] : memref<128x128xbf16, #tpu.memory_space<vmem>>, vector<128x128xbf16>
    %cst_14 = arith.constant dense<0.000000e+00> : vector<16x128xf32>
    %18 = tpu.matmul %16, %17, %cst_14 {dimension_numbers = #tpu.dot_dimension_numbers<[1], [0], [0], [1], [0, 0, 1, 1], [], []>} : vector<16x128xbf16>, vector<128x128xbf16>, vector<16x128xf32> -> vector<16x128xf32>
    %c0_15 = arith.constant 0 : index
    %c0_16 = arith.constant 0 : index
    %19 = vector.load %arg7[%c0_15, %c0_16] : memref<1x128xf32, #tpu.memory_space<vmem>>, vector<1x128xf32>
    %20 = vector.broadcast %19 : vector<1x128xf32> to vector<16x128xf32>
    %21 = arith.addf %18, %20 : vector<16x128xf32>
    %cst_17 = arith.constant 0.000000e+00 : f32
    %22 = vector.broadcast %cst_17 : f32 to vector<16x128xf32>
    %23 = arith.maximumf %21, %22 : vector<16x128xf32>
    %24 = tpu.iota {dimensions = array<i32: 1>} : vector<16x128xi32>
    %c8_i32 = arith.constant 8 : i32
    %25 = vector.broadcast %c8_i32 : i32 to vector<16x128xi32>
    %26 = arith.cmpi slt, %24, %25 : vector<16x128xi32>
    %cst_18 = arith.constant 0xFF800000 : f32
    %27 = vector.broadcast %cst_18 : f32 to vector<16x128xf32>
    %28 = arith.select %26, %23, %27 : vector<16x128xi1>, vector<16x128xf32>
    %cst_19 = arith.constant dense<0xFF800000> : vector<16xf32>
    %29 = vector.multi_reduction <maximumf>, %28, %cst_19 [1] : vector<16x128xf32> to vector<16xf32>
    %30 = vector.shape_cast %29 : vector<16xf32> to vector<16x1xf32>
    %31 = vector.broadcast %30 : vector<16x1xf32> to vector<16x128xf32>
    %32 = arith.subf %28, %31 : vector<16x128xf32>
    %33 = math.exp %32 : vector<16x128xf32>
    %cst_20 = arith.constant dense<0.000000e+00> : vector<16xf32>
    %34 = vector.multi_reduction <add>, %33, %cst_20 [1] : vector<16x128xf32> to vector<16xf32>
    %35 = vector.shape_cast %34 : vector<16xf32> to vector<16x1xf32>
    %36 = tpu.reciprocal %35 {approx = true} : vector<16x1xf32> -> vector<16x1xf32>
    %37 = vector.broadcast %36 : vector<16x1xf32> to vector<16x128xf32>
    %38 = arith.mulf %33, %37 : vector<16x128xf32>
    %c0_21 = arith.constant 0 : index
    %c0_22 = arith.constant 0 : index
    %39 = vector.load %arg8[%c0_21, %c0_22] : memref<16x128xf32, #tpu.memory_space<vmem>>, vector<16x128xf32>
    tpu.vector_store %arg8[%c0_21, %c0_22], %38 {strides = array<i32>} : memref<16x128xf32, #tpu.memory_space<vmem>>, vector<16x128xf32>,
    return
  }
  func.func @transform_0(%arg0: i32) -> (i32, i32) {
    %c0_i32 = arith.constant 0 : i32
    %c0_i32_0 = arith.constant 0 : i32
    return %arg0, %c0_i32 : i32, i32
  }
  func.func @transform_1(%arg0: i32) -> (i32, i32) {
    %c0_i32 = arith.constant 0 : i32
    %c0_i32_0 = arith.constant 0 : i32
    %c0_i32_1 = arith.constant 0 : i32
    return %c0_i32, %c0_i32_0 : i32, i32
  }
  func.func @transform_2(%arg0: i32) -> (i32, i32) {
    %c0_i32 = arith.constant 0 : i32
    %c0_i32_0 = arith.constant 0 : i32
    %c0_i32_1 = arith.constant 0 : i32
    return %c0_i32, %c0_i32_0 : i32, i32
  }
  func.func @transform_3(%arg0: i32) -> (i32, i32) {
    %c0_i32 = arith.constant 0 : i32
    %c0_i32_0 = arith.constant 0 : i32
    %c0_i32_1 = arith.constant 0 : i32
    return %c0_i32, %c0_i32_0 : i32, i32
  }
  func.func @transform_4(%arg0: i32) -> (i32, i32) {
    %c0_i32 = arith.constant 0 : i32
    %c0_i32_0 = arith.constant 0 : i32
    %c0_i32_1 = arith.constant 0 : i32
    return %c0_i32, %c0_i32_0 : i32, i32
  }
  func.func @transform_5(%arg0: i32) -> (i32, i32) {
    %c0_i32 = arith.constant 0 : i32
    %c0_i32_0 = arith.constant 0 : i32
    %c0_i32_1 = arith.constant 0 : i32
    return %c0_i32, %c0_i32_0 : i32, i32
  }
  func.func @transform_6(%arg0: i32) -> (i32, i32) {
    %c0_i32 = arith.constant 0 : i32
    %c0_i32_0 = arith.constant 0 : i32
    %c0_i32_1 = arith.constant 0 : i32
    return %c0_i32, %c0_i32_0 : i32, i32
  }
  func.func @transform_7(%arg0: i32) -> (i32, i32) {
    %c0_i32 = arith.constant 0 : i32
    %c0_i32_0 = arith.constant 0 : i32
    return %arg0, %c0_i32 : i32, i32
  }
}

module attributes {stable_mosaic.version = 11 : i64} {
  func.func @kernel(%arg0: i32, %arg1: memref<16x128xbf16, #tpu.memory_space<vmem>>, %arg2: memref<128x128xbf16, #tpu.memory_space<vmem>>, %arg3: memref<1x128xf32, #tpu.memory_space<vmem>>, %arg4: memref<128x128xbf16, #tpu.memory_space<vmem>>, %arg5: memref<1x128xf32, #tpu.memory_space<vmem>>, %arg6: memref<128x128xbf16, #tpu.memory_space<vmem>>, %arg7: memref<1x128xf32, #tpu.memory_space<vmem>>, %arg8: memref<16x128xf32, #tpu.memory_space<vmem>>) attributes {dimension_semantics = [#tpu.dimension_semantics<parallel>], iteration_bounds = array<i64: 1>, scalar_prefetch = 0 : i64, scratch_operands = 0 : i64, tpu.core_type = #tpu.core_type<tc>, window_params = [{transform_indices = @transform_0, window_bounds = array<i64: 16, 128>}, {pipeline_mode = #tpu.pipeline_mode<synchronous>, transform_indices = @transform_1, window_bounds = array<i64: 128, 128>}, {pipeline_mode = #tpu.pipeline_mode<synchronous>, transform_indices = @transform_2, window_bounds = array<i64: 1, 128>}, {pipeline_mode = #tpu.pipeline_mode<synchronous>, transform_indices = @transform_3, window_bounds = array<i64: 128, 128>}, {pipeline_mode = #tpu.pipeline_mode<synchronous>, transform_indices = @transform_4, window_bounds = array<i64: 1, 128>}, {pipeline_mode = #tpu.pipeline_mode<synchronous>, transform_indices = @transform_5, window_bounds = array<i64: 128, 128>}, {pipeline_mode = #tpu.pipeline_mode<synchronous>, transform_indices = @transform_6, window_bounds = array<i64: 1, 128>}, {transform_indices = @transform_7, window_bounds = array<i64: 16, 128>}]} {
    %c0 = arith.constant 0 : index
    %c0_0 = arith.constant 0 : index
    %0 = vector.load %arg1[%c0, %c0_0] : memref<16x128xbf16, #tpu.memory_space<vmem>>, vector<16x128xbf16>
    %c0_1 = arith.constant 0 : index
    %c0_2 = arith.constant 0 : index
    %1 = vector.load %arg2[%c0_1, %c0_2] : memref<128x128xbf16, #tpu.memory_space<vmem>>, vector<128x128xbf16>
    %cst = arith.constant dense<0.000000e+00> : vector<16x128xf32>
    %2 = tpu.matmul %0, %1, %cst {dimension_numbers = #tpu.dot_dimension_numbers<[1], [0], [0], [1], [0, 0, 1, 1], [], []>} : vector<16x128xbf16>, vector<128x128xbf16>, vector<16x128xf32> -> vector<16x128xf32>
    %c0_3 = arith.constant 0 : index
    %c0_4 = arith.constant 0 : index
    %3 = vector.load %arg3[%c0_3, %c0_4] : memref<1x128xf32, #tpu.memory_space<vmem>>, vector<1x128xf32>
    %4 = vector.broadcast %3 : vector<1x128xf32> to vector<16x128xf32>
    %5 = arith.addf %2, %4 : vector<16x128xf32>
    %cst_5 = arith.constant 0.000000e+00 : f32
    %6 = vector.broadcast %cst_5 : f32 to vector<16x128xf32>
    %7 = arith.maximumf %5, %6 : vector<16x128xf32>
    %8 = arith.truncf %7 : vector<16x128xf32> to vector<16x128xbf16>
    %c0_6 = arith.constant 0 : index
    %c0_7 = arith.constant 0 : index
    %9 = vector.load %arg4[%c0_6, %c0_7] : memref<128x128xbf16, #tpu.memory_space<vmem>>, vector<128x128xbf16>
    %cst_8 = arith.constant dense<0.000000e+00> : vector<16x128xf32>
    %10 = tpu.matmul %8, %9, %cst_8 {dimension_numbers = #tpu.dot_dimension_numbers<[1], [0], [0], [1], [0, 0, 1, 1], [], []>} : vector<16x128xbf16>, vector<128x128xbf16>, vector<16x128xf32> -> vector<16x128xf32>
    %c0_9 = arith.constant 0 : index
    %c0_10 = arith.constant 0 : index
    %11 = vector.load %arg5[%c0_9, %c0_10] : memref<1x128xf32, #tpu.memory_space<vmem>>, vector<1x128xf32>
    %12 = vector.broadcast %11 : vector<1x128xf32> to vector<16x128xf32>
    %13 = arith.addf %10, %12 : vector<16x128xf32>
    %cst_11 = arith.constant 0.000000e+00 : f32
    %14 = vector.broadcast %cst_11 : f32 to vector<16x128xf32>
    %15 = arith.maximumf %13, %14 : vector<16x128xf32>
    %16 = arith.truncf %15 : vector<16x128xf32> to vector<16x128xbf16>
    %c0_12 = arith.constant 0 : index
    %c0_13 = arith.constant 0 : index
    %17 = vector.load %arg6[%c0_12, %c0_13] : memref<128x128xbf16, #tpu.memory_space<vmem>>, vector<128x128xbf16>
    %cst_14 = arith.constant dense<0.000000e+00> : vector<16x128xf32>
    %18 = tpu.matmul %16, %17, %cst_14 {dimension_numbers = #tpu.dot_dimension_numbers<[1], [0], [0], [1], [0, 0, 1, 1], [], []>} : vector<16x128xbf16>, vector<128x128xbf16>, vector<16x128xf32> -> vector<16x128xf32>
    %c0_15 = arith.constant 0 : index
    %c0_16 = arith.constant 0 : index
    %19 = vector.load %arg7[%c0_15, %c0_16] : memref<1x128xf32, #tpu.memory_space<vmem>>, vector<1x128xf32>
    %20 = vector.broadcast %19 : vector<1x128xf32> to vector<16x128xf32>
    %21 = arith.addf %18, %20 : vector<16x128xf32>
    %cst_17 = arith.constant 0.000000e+00 : f32
    %22 = vector.broadcast %cst_17 : f32 to vector<16x128xf32>
    %23 = arith.maximumf %21, %22 : vector<16x128xf32>
    %24 = tpu.iota {dimensions = array<i32: 1>} : vector<16x128xi32>
    %c8_i32 = arith.constant 8 : i32
    %25 = vector.broadcast %c8_i32 : i32 to vector<16x128xi32>
    %26 = arith.cmpi slt, %24, %25 : vector<16x128xi32>
    %cst_18 = arith.constant 0xFF800000 : f32
    %27 = vector.broadcast %cst_18 : f32 to vector<16x128xf32>
    %28 = arith.select %26, %23, %27 : vector<16x128xi1>, vector<16x128xf32>
    %cst_19 = arith.constant dense<0xFF800000> : vector<16xf32>
    %29 = vector.multi_reduction <maximumf>, %28, %cst_19 [1] : vector<16x128xf32> to vector<16xf32>
    %30 = vector.shape_cast %29 : vector<16xf32> to vector<16x1xf32>
    %31 = vector.broadcast %30 : vector<16x1xf32> to vector<16x128xf32>
    %32 = arith.subf %28, %31 : vector<16x128xf32>
    %33 = math.exp %32 : vector<16x128xf32>
    %cst_20 = arith.constant dense<0.000000e+00> : vector<16xf32>
    %34 = vector.multi_reduction <add>, %33, %cst_20 [1] : vector<16x128xf32> to vector<16xf32>
    %35 = vector.shape_cast %34 : vector<16xf32> to vector<16x1xf32>
    %36 = tpu.reciprocal %35 {approx = true} : vector<16x1xf32> -> vector<16x1xf32>
    %37 = vector.broadcast %36 : vector<16x1xf32> to vector<16x128xf32>
    %38 = arith.mulf %33, %37 : vector<16x128xf32>
    %c0_21 = arith.constant 0 : index
    %c0_22 = arith.constant 0 : index
    %39 = vector.load %arg8[%c0_21, %c0_22] : memref<16x128xf32, #tpu.memory_space<vmem>>, vector<16x128xf32>
    tpu.vector_store %arg8[%c0_21, %c0_22], %38 {strides = array<i32>} : memref<16x128xf32, #tpu.memory_space<vmem>>, vector<16x128xf32>,
    return
  }
  func.func @transform_0(%arg0: i32) -> (i32, i32) {
    %c0_i32 = arith.constant 0 : i32
    %c0_i32_0 = arith.constant 0 : i32
    return %arg0, %c0_i32 : i32, i32
  }
  func.func @transform_1(%arg0: i32) -> (i32, i32) {
    %c0_i32 = arith.constant 0 : i32
    %c0_i32_0 = arith.constant 0 : i32
    %c0_i32_1 = arith.constant 0 : i32
    return %c0_i32, %c0_i32_0 : i32, i32
  }
  func.func @transform_2(%arg0: i32) -> (i32, i32) {
    %c0_i32 = arith.constant 0 : i32
    %c0_i32_0 = arith.constant 0 : i32
    %c0_i32_1 = arith.constant 0 : i32
    return %c0_i32, %c0_i32_0 : i32, i32
  }
  func.func @transform_3(%arg0: i32) -> (i32, i32) {
    %c0_i32 = arith.constant 0 : i32
    %c0_i32_0 = arith.constant 0 : i32
    %c0_i32_1 = arith.constant 0 : i32
    return %c0_i32, %c0_i32_0 : i32, i32
  }
  func.func @transform_4(%arg0: i32) -> (i32, i32) {
    %c0_i32 = arith.constant 0 : i32
    %c0_i32_0 = arith.constant 0 : i32
    %c0_i32_1 = arith.constant 0 : i32
    return %c0_i32, %c0_i32_0 : i32, i32
  }
  func.func @transform_5(%arg0: i32) -> (i32, i32) {
    %c0_i32 = arith.constant 0 : i32
    %c0_i32_0 = arith.constant 0 : i32
    %c0_i32_1 = arith.constant 0 : i32
    return %c0_i32, %c0_i32_0 : i32, i32
  }
  func.func @transform_6(%arg0: i32) -> (i32, i32) {
    %c0_i32 = arith.constant 0 : i32
    %c0_i32_0 = arith.constant 0 : i32
    %c0_i32_1 = arith.constant 0 : i32
    return %c0_i32, %c0_i32_0 : i32, i32
  }
  func.func @transform_7(%arg0: i32) -> (i32, i32) {
    %c0_i32 = arith.constant 0 : i32
    %c0_i32_0 = arith.constant 0 : i32
    return %arg0, %c0_i32 : i32, i32
  }
}

</mosaic_0001>

<bundles_post_ra>
// kernel: tpu_custom_call.1
= control target key start
LH: loop header
LB: loop body
LE: loop exit
PB: predicated region body
PF: predicated region fallthrough
CT: control target
= control target key end

     0   :  { %12 = vsyncpa [#allocation3], 0  ;;  %s744_s0 = inlined_call_operand.hbm [shape: bf16[16,128], index: 0, kind: input, shape index: {}]   ;;  %s745_s1 = inlined_call_operand.hbm [shape: bf16[128,128], index: 1, kind: input, shape index: {}]   ;;  %s746_s2 = inlined_call_operand.vmem [shape: f32[1,128], index: 2, kind: input, shape index: {}]   ;;  %s747_s3 = inlined_call_operand.hbm [shape: bf16[128,128], index: 3, kind: input, shape index: {}]   ;;  %s748_s4 = inlined_call_operand.vmem [shape: f32[1,128], index: 4, kind: input, shape index: {}]   ;;  %s749_s5 = inlined_call_operand.hbm [shape: bf16[128,128], index: 5, kind: input, shape index: {}]   ;;  %s750_s6 = inlined_call_operand.vmem [shape: f32[1,128], index: 6, kind: input, shape index: {}]   ;;  %s751_s7 = inlined_call_operand.hbm [shape: f32[16,128], index: 7, kind: output, shape index: {}]  }
   0x1   :  { %13 = vsyncpa [#allocation6], 0 }
   0x2   :  { %14 = vsyncpa [#allocation9], 0 }
   0x3   :  { %15 = vsyncpa [#allocation4], 0  ;;  %s33_s26 = sshll.u32 %s745_s1, 4  ;;  %s671_s27 = smov [#allocation5]   ;;  %s34_s26 = int_to_ptr.hbm [resolvable:$true] %s33_s26 }
   0x4   :  { %s35_s28 = sshll.u32 %s671_s27, 4  ;;  %s20_s8 = sshll.u32 %s744_s0, 4  ;;  %s36_s28 = int_to_ptr.vmem [resolvable:$true] %s35_s28  ;;  %s21_s8 = int_to_ptr.hbm [resolvable:$true] %s20_s8 }
   0x5   :  { %s672_s9 = smov 64   ;;  %s673_s10 = smov 4  }
   0x6   :  { %41 = dma.hbm_to_vmem [thread:$0]  %s34_s26, 1024, %s36_s28, [#allocation6], %s672_s9, %s672_s9, %s673_s10  }
   0x7   :  { %s674_s11 = smov [#allocation2]   ;;  %s48_s15 = sshll.u32 %s747_s3, 4  ;;  %s49_s15 = int_to_ptr.hbm [resolvable:$true] %s48_s15 }
   0x8   :  { %s22_s12 = sshll.u32 %s674_s11, 4  ;;  %s63_s17 = sshll.u32 %s749_s5, 4  ;;  %s23_s12 = int_to_ptr.vmem [resolvable:$true] %s22_s12  ;;  %s64_s17 = int_to_ptr.hbm [resolvable:$true] %s63_s17 }
   0x9   :  { %28 = dma.hbm_to_vmem [thread:$0]  %s21_s8, 128, %s23_s12, [#allocation3], %s672_s9, %s672_s9, %s673_s10  }
   0xa   :  { %s675_s18 = smov [#allocation7]   ;;  %s676_s0 = smov [#allocation8]  }
   0xb   :  { %s50_s19 = sshll.u32 %s675_s18, 4  ;;  %s65_s20 = sshll.u32 %s676_s0, 4  ;;  %s51_s19 = int_to_ptr.vmem [resolvable:$true] %s50_s19  ;;  %s66_s20 = int_to_ptr.vmem [resolvable:$true] %s65_s20 }
   0xc   :  { %56 = dma.hbm_to_vmem [thread:$0]  %s49_s15, 1024, %s51_s19, [#allocation6], %s672_s9, %s672_s9, %s673_s10  }
   0xd   :  { %71 = dma.hbm_to_vmem [thread:$0]  %s64_s17, 1024, %s66_s20, [#allocation9], %s672_s9, %s672_s9, %s673_s10  }
   0xe   :  { %663 = dma.done.wait [#allocation3], 128  }
   0xf   :  { %664 = vsyncadd [#allocation3], 4294967168 }
  0x10   :  { %665 = dma.done.wait [#allocation6], 2048  }
  0x11   :  { %666 = vsyncadd [#allocation6], 4294965248 }
  0x12   :  { %667 = dma.done.wait [#allocation9], 1024  }
  0x13   :  { %668 = vsyncadd [#allocation9], 4294966272  ;;  %v506_v0 = vld [vmem:[#allocation5 + $0x38] sm:$0xff]  ;;  %v505_v1 = vld [vmem:[#allocation5 + $0x30] sm:$0xff]  ;;  %v352_v41 = vlaneseq  ;;  %s383_s26 = sshll.u32 %s751_s7, 4  ;;  %s678_s27 = smov 128   ;;  %s384_s26 = int_to_ptr.hbm [resolvable:$true] %s383_s26 }
  0x14   :  { %166 = vmatpush.bf16.msra.mxu0 %v506_v0  ;;  %v514_v2 = vld [vmem:[#allocation7 + $0x38] sm:$0xff]  ;;  %v513_v3 = vld [vmem:[#allocation7 + $0x30] sm:$0xff]  ;;  %v504_v4 = vld [vmem:[#allocation5 + $0x28] sm:$0xff]  ;;  %s679_s28 = smov 8  }
  0x15   :  { %251 = vmatpush.bf16.msra.mxu1 %v514_v2  ;;  %v512_v5 = vld [vmem:[#allocation7 + $0x28] sm:$0xff]  ;;  %v503_v6 = vld [vmem:[#allocation5 + $0x20] sm:$0xff]  ;;  %v502_v8 = vld [vmem:[#allocation5 + $0x18] sm:$0xff]  ;;  %v353_v43 = vand.u32 127, %v352_v41 }
  0x16   :  { %v511_v7 = vld [vmem:[#allocation7 + $0x20] sm:$0xff]  ;;  %v501_v9 = vld [vmem:[#allocation5 + $0x10] sm:$0xff]  ;;  %v500_v10 = vld [vmem:[#allocation5 + $0x8] sm:$0xff] }
  0x17   :  { %v499_v11 = vld [vmem:[#allocation5] sm:$0xff]  ;;  %v498_v12 = vld [vmem:[#allocation2] sm:$0xff]  ;;  %v509_v14 = vld [vmem:[#allocation7 + $0x10] sm:$0xff]  ;;  %vm354_vm0 = vcmp.lt.s32.totalorder %v353_v43, 8 }
  0x18   :  { %167 = vmatpush.bf16.msra.mxu0 %v505_v1  ;;  %v510_v13 = vld [vmem:[#allocation7 + $0x18] sm:$0xff]  ;;  %v508_v15 = vld [vmem:[#allocation7 + $0x8] sm:$0xff]  ;;  %v507_v16 = vld [vmem:[#allocation7] sm:$0xff] }
  0x19   :  { %252 = vmatpush.bf16.msra.mxu1 %v513_v3  ;;  %v522_v17 = vld [vmem:[#allocation8 + $0x38] sm:$0xff]  ;;  %v521_v18 = vld [vmem:[#allocation8 + $0x30] sm:$0xff]  ;;  %v520_v19 = vld [vmem:[#allocation8 + $0x28] sm:$0xff] }
  0x1a   :  { %336 = vmatpush.bf16.msra.mxu2 %v522_v17  ;;  %v519_v20 = vld [vmem:[#allocation8 + $0x20] sm:$0xff]  ;;  %v532_v22 = vld [vmem:[%s746_s2] ss:$0 sm:$0xff]  ;;  %v517_v30 = vld [vmem:[#allocation8 + $0x10] sm:$0xff] }
  0x1b   :  { %v518_v29 = vld [vmem:[#allocation8 + $0x18] sm:$0xff]  ;;  %v516_v31 = vld [vmem:[#allocation8 + $0x8] sm:$0xff]  ;;  %v515_v32 = vld [vmem:[#allocation8] sm:$0xff] }
  0x1c   :  { %168 = vmatpush.bf16.msra.mxu0 %v504_v4  ;;  %v533_v34 = vld [vmem:[%s748_s4] ss:$0 sm:$0xff]  ;;  %s677_s4 = smov [#allocation10]  }
  0x1d   :  { %253 = vmatpush.bf16.msra.mxu1 %v512_v5  ;;  %v534_v42 = vld [vmem:[%s750_s6] ss:$0 sm:$0xff]  ;;  %s381_s6 = sshll.u32 %s677_s4, 4  ;;  %s382_s6 = int_to_ptr.vmem [resolvable:$true] %s381_s6 }
  0x1e   :  { %337 = vmatpush.bf16.msra.mxu2 %v521_v18 }
  0x20   :  { %169 = vmatpush.bf16.msra.mxu0 %v503_v6 }
  0x21   :  { %254 = vmatpush.bf16.msra.mxu1 %v511_v7 }
  0x22   :  { %338 = vmatpush.bf16.msra.mxu2 %v520_v19 }
  0x24   :  { %170 = vmatpush.bf16.msra.mxu0 %v502_v8 }
  0x25   :  { %255 = vmatpush.bf16.msra.mxu1 %v510_v13 }
  0x26   :  { %339 = vmatpush.bf16.msra.mxu2 %v519_v20 }
  0x28   :  { %171 = vmatpush.bf16.msra.mxu0 %v501_v9 }
  0x29   :  { %256 = vmatpush.bf16.msra.mxu1 %v509_v14 }
  0x2a   :  { %340 = vmatpush.bf16.msra.mxu2 %v518_v29 }
  0x2c   :  { %172 = vmatpush.bf16.msra.mxu0 %v500_v10 }
  0x2d   :  { %257 = vmatpush.bf16.msra.mxu1 %v508_v15 }
  0x2e   :  { %341 = vmatpush.bf16.msra.mxu2 %v517_v30 }
  0x30   :  { %173 = vmatpush.bf16.msra.mxu0 %v499_v11 }
  0x31   :  { %258 = vmatpush.bf16.msra.mxu1 %v507_v16 }
  0x32   :  { %342 = vmatpush.bf16.msra.mxu2 %v516_v31 }
  0x33   :  { %174 = vmatmul.bf16.vlgmr.msra.gmra.mxu0 %v498_v12 }
  0x36   :  { %343 = vmatpush.bf16.msra.mxu2 %v515_v32 }
  0xb0   :  { %v175_v21 = vpop.f32.mrf.mxu0 }
  0xb1   :  { %v176_v23 = vadd.f32 %v532_v22, %v175_v21 }
  0xb3   :  { %v180_v26 = vmax.f32 %v176_v23, 0.0 }
  0xb8   :  { %v177_v24 = vpop.f32.mrf.mxu0 }
  0xb9   :  { %v178_v25 = vadd.f32 %v532_v22, %v177_v24 }
  0xbb   :  { %v181_v27 = vmax.f32 %v178_v25, 0.0 }
  0xbd   :  { %v182_v28 = vpack.c.bf16 %v181_v27, %v180_v26 }
  0xbf   :  { %259 = vmatmul.bf16.vlgmr.msra.gmra.mxu1 %v182_v28 }
 0x13c   :  { %v260_v33 = vpop.f32.mrf.mxu1 }
 0x13d   :  { %v261_v35 = vadd.f32 %v533_v34, %v260_v33 }
 0x13f   :  { %v265_v38 = vmax.f32 %v261_v35, 0.0 }
 0x144   :  { %v262_v36 = vpop.f32.mrf.mxu1 }
 0x145   :  { %v263_v37 = vadd.f32 %v533_v34, %v262_v36 }
 0x147   :  { %v266_v39 = vmax.f32 %v263_v37, 0.0 }
 0x149   :  { %v267_v40 = vpack.c.bf16 %v266_v39, %v265_v38 }
 0x14b   :  { %344 = vmatmul.bf16.vlgmr.msra.gmra.mxu2 %v267_v40 }
 0x1ce   :  { %v345_v44 = vpop.f32.mrf.mxu2 }
 0x1cf   :  { %v346_v45 = vadd.f32 %v534_v42, %v345_v44 }
 0x1d1   :  { %v350_v46 = vmax.f32 %v346_v45, 0.0 }
 0x1d3   :  { %v355_v47 = vsel %vm354_vm0, %v350_v46, -inf }
 0x1d4   :  { %357 = vmax.xlane.f32.xlu0 %v355_v47 }
 0x1d6   :  { %v347_v48 = vpop.f32.mrf.mxu2 }
 0x1d7   :  { %v348_v49 = vadd.f32 %v534_v42, %v347_v48 }
 0x1d9   :  { %v351_v50 = vmax.f32 %v348_v49, 0.0 }
 0x1db   :  { %v356_v51 = vsel %vm354_vm0, %v351_v50, -inf }
 0x1dc   :  { %359 = vmax.xlane.f32.xlu0 %v356_v51 }
 0x247   :  { %v358_v52 = vpop.xlane.xlu0 %357 }
 0x248   :  { %v361_v53 = vsub.f32 %v355_v47, %v358_v52 }
 0x24a   :  { %v363_v54 = vmul.f32 1.442695, %v361_v53 }
 0x24c   :  { %535 = vpow2.f32 %v363_v54 }
 0x24f   :  { %v360_v55 = vpop.xlane.xlu0 %359 }
 0x250   :  { %v362_v56 = vsub.f32 %v356_v51, %v360_v55 }
 0x252   :  { %v536_v57 = vpop.eup %535  ;;  %v365_v58 = vmul.f32 1.442695, %v362_v56 }
 0x253   :  { %367 = vadd.xlane.f32.xlu1 %v536_v57 }
 0x254   :  { %537 = vpow2.f32 %v365_v58 }
 0x25a   :  { %v538_v59 = vpop.eup %537 }
 0x25b   :  { %369 = vadd.xlane.f32.xlu1 %v538_v59 }
 0x2c6   :  { %v368_v60 = vpop.xlane.xlu1 %367 }
 0x2c7   :  { %539 = vrcp.f32 %v368_v60 }
 0x2cd   :  { %v540_v61 = vpop.eup %539 }
 0x2ce   :  { %v373_v62 = vmul.f32 %v540_v61, %v536_v57  ;;  %v370_v63 = vpop.xlane.xlu1 %369 }
 0x2cf   :  { %541 = vrcp.f32 %v370_v63 }
 0x2d0   :  { %375 = vst [vmem:[#allocation10] sm:$0xff] %v373_v62 }
 0x2d5   :  { %v542_v0 = vpop.eup %541 }
 0x2d6   :  { %v374_v1 = vmul.f32 %v542_v0, %v538_v59 }
 0x2d8   :  { %376 = vst [vmem:[#allocation10 + $0x8] sm:$0xff] %v374_v1 }
 0x2d9   :  { %389 = dma.vmem_to_hbm [thread:$0]  %s382_s6, 256, %s384_s26, [#allocation4], %s678_s27, %s678_s27, %s679_s28  }
 0x2da   :  { %669 = dma.done.wait [#allocation4], 256  }
 0x2db   :  { %670 = vsyncadd [#allocation4], 4294967040 }
 0x2dc   :  { %394 = vsyncpa [#allocation3], 1 }
 0x2dd   :  { %395 = vsyncpa [#allocation6], 1 }
 0x2de   :  { %396 = vsyncpa [#allocation9], 1 }
 0x2df   :  { %397 = vsyncpa [#allocation4], 1 }

// kernel: tpu_custom_call.1
= control target key start
LH: loop header
LB: loop body
LE: loop exit
PB: predicated region body
PF: predicated region fallthrough
CT: control target
= control target key end

     0   :  { %12 = vsyncpa [#allocation3], 0  ;;  %s744_s0 = inlined_call_operand.hbm [shape: bf16[16,128], index: 0, kind: input, shape index: {}]   ;;  %s745_s1 = inlined_call_operand.hbm [shape: bf16[128,128], index: 1, kind: input, shape index: {}]   ;;  %s746_s2 = inlined_call_operand.vmem [shape: f32[1,128], index: 2, kind: input, shape index: {}]   ;;  %s747_s3 = inlined_call_operand.hbm [shape: bf16[128,128], index: 3, kind: input, shape index: {}]   ;;  %s748_s4 = inlined_call_operand.vmem [shape: f32[1,128], index: 4, kind: input, shape index: {}]   ;;  %s749_s5 = inlined_call_operand.hbm [shape: bf16[128,128], index: 5, kind: input, shape index: {}]   ;;  %s750_s6 = inlined_call_operand.vmem [shape: f32[1,128], index: 6, kind: input, shape index: {}]   ;;  %s751_s7 = inlined_call_operand.hbm [shape: f32[16,128], index: 7, kind: output, shape index: {}]  }
   0x1   :  { %13 = vsyncpa [#allocation6], 0 }
   0x2   :  { %14 = vsyncpa [#allocation9], 0 }
   0x3   :  { %15 = vsyncpa [#allocation4], 0  ;;  %s33_s26 = sshll.u32 %s745_s1, 4  ;;  %s671_s27 = smov [#allocation5]   ;;  %s34_s26 = int_to_ptr.hbm [resolvable:$true] %s33_s26 }
   0x4   :  { %s35_s28 = sshll.u32 %s671_s27, 4  ;;  %s20_s8 = sshll.u32 %s744_s0, 4  ;;  %s36_s28 = int_to_ptr.vmem [resolvable:$true] %s35_s28  ;;  %s21_s8 = int_to_ptr.hbm [resolvable:$true] %s20_s8 }
   0x5   :  { %s672_s9 = smov 64   ;;  %s673_s10 = smov 4  }
   0x6   :  { %41 = dma.hbm_to_vmem [thread:$0]  %s34_s26, 1024, %s36_s28, [#allocation6], %s672_s9, %s672_s9, %s673_s10  }
   0x7   :  { %s674_s11 = smov [#allocation2]   ;;  %s48_s15 = sshll.u32 %s747_s3, 4  ;;  %s49_s15 = int_to_ptr.hbm [resolvable:$true] %s48_s15 }
   0x8   :  { %s22_s12 = sshll.u32 %s674_s11, 4  ;;  %s63_s17 = sshll.u32 %s749_s5, 4  ;;  %s23_s12 = int_to_ptr.vmem [resolvable:$true] %s22_s12  ;;  %s64_s17 = int_to_ptr.hbm [resolvable:$true] %s63_s17 }
   0x9   :  { %28 = dma.hbm_to_vmem [thread:$0]  %s21_s8, 128, %s23_s12, [#allocation3], %s672_s9, %s672_s9, %s673_s10  }
   0xa   :  { %s675_s18 = smov [#allocation7]   ;;  %s676_s0 = smov [#allocation8]  }
   0xb   :  { %s50_s19 = sshll.u32 %s675_s18, 4  ;;  %s65_s20 = sshll.u32 %s676_s0, 4  ;;  %s51_s19 = int_to_ptr.vmem [resolvable:$true] %s50_s19  ;;  %s66_s20 = int_to_ptr.vmem [resolvable:$true] %s65_s20 }
   0xc   :  { %56 = dma.hbm_to_vmem [thread:$0]  %s49_s15, 1024, %s51_s19, [#allocation6], %s672_s9, %s672_s9, %s673_s10  }
   0xd   :  { %71 = dma.hbm_to_vmem [thread:$0]  %s64_s17, 1024, %s66_s20, [#allocation9], %s672_s9, %s672_s9, %s673_s10  }
   0xe   :  { %663 = dma.done.wait [#allocation3], 128  }
   0xf   :  { %664 = vsyncadd [#allocation3], 4294967168 }
  0x10   :  { %665 = dma.done.wait [#allocation6], 2048  }
  0x11   :  { %666 = vsyncadd [#allocation6], 4294965248 }
  0x12   :  { %667 = dma.done.wait [#allocation9], 1024  }
  0x13   :  { %668 = vsyncadd [#allocation9], 4294966272  ;;  %v506_v0 = vld [vmem:[#allocation5 + $0x38] sm:$0xff]  ;;  %v505_v1 = vld [vmem:[#allocation5 + $0x30] sm:$0xff]  ;;  %v352_v41 = vlaneseq  ;;  %s383_s26 = sshll.u32 %s751_s7, 4  ;;  %s678_s27 = smov 128   ;;  %s384_s26 = int_to_ptr.hbm [resolvable:$true] %s383_s26 }
  0x14   :  { %166 = vmatpush.bf16.msra.mxu0 %v506_v0  ;;  %v514_v2 = vld [vmem:[#allocation7 + $0x38] sm:$0xff]  ;;  %v513_v3 = vld [vmem:[#allocation7 + $0x30] sm:$0xff]  ;;  %v504_v4 = vld [vmem:[#allocation5 + $0x28] sm:$0xff]  ;;  %s679_s28 = smov 8  }
  0x15   :  { %251 = vmatpush.bf16.msra.mxu1 %v514_v2  ;;  %v512_v5 = vld [vmem:[#allocation7 + $0x28] sm:$0xff]  ;;  %v503_v6 = vld [vmem:[#allocation5 + $0x20] sm:$0xff]  ;;  %v502_v8 = vld [vmem:[#allocation5 + $0x18] sm:$0xff]  ;;  %v353_v43 = vand.u32 127, %v352_v41 }
  0x16   :  { %v511_v7 = vld [vmem:[#allocation7 + $0x20] sm:$0xff]  ;;  %v501_v9 = vld [vmem:[#allocation5 + $0x10] sm:$0xff]  ;;  %v500_v10 = vld [vmem:[#allocation5 + $0x8] sm:$0xff] }
  0x17   :  { %v499_v11 = vld [vmem:[#allocation5] sm:$0xff]  ;;  %v498_v12 = vld [vmem:[#allocation2] sm:$0xff]  ;;  %v509_v14 = vld [vmem:[#allocation7 + $0x10] sm:$0xff]  ;;  %vm354_vm0 = vcmp.lt.s32.totalorder %v353_v43, 8 }
  0x18   :  { %167 = vmatpush.bf16.msra.mxu0 %v505_v1  ;;  %v510_v13 = vld [vmem:[#allocation7 + $0x18] sm:$0xff]  ;;  %v508_v15 = vld [vmem:[#allocation7 + $0x8] sm:$0xff]  ;;  %v507_v16 = vld [vmem:[#allocation7] sm:$0xff] }
  0x19   :  { %252 = vmatpush.bf16.msra.mxu1 %v513_v3  ;;  %v522_v17 = vld [vmem:[#allocation8 + $0x38] sm:$0xff]  ;;  %v521_v18 = vld [vmem:[#allocation8 + $0x30] sm:$0xff]  ;;  %v520_v19 = vld [vmem:[#allocation8 + $0x28] sm:$0xff] }
  0x1a   :  { %336 = vmatpush.bf16.msra.mxu2 %v522_v17  ;;  %v519_v20 = vld [vmem:[#allocation8 + $0x20] sm:$0xff]  ;;  %v532_v22 = vld [vmem:[%s746_s2] ss:$0 sm:$0xff]  ;;  %v517_v30 = vld [vmem:[#allocation8 + $0x10] sm:$0xff] }
  0x1b   :  { %v518_v29 = vld [vmem:[#allocation8 + $0x18] sm:$0xff]  ;;  %v516_v31 = vld [vmem:[#allocation8 + $0x8] sm:$0xff]  ;;  %v515_v32 = vld [vmem:[#allocation8] sm:$0xff] }
  0x1c   :  { %168 = vmatpush.bf16.msra.mxu0 %v504_v4  ;;  %v533_v34 = vld [vmem:[%s748_s4] ss:$0 sm:$0xff]  ;;  %s677_s4 = smov [#allocation10]  }
  0x1d   :  { %253 = vmatpush.bf16.msra.mxu1 %v512_v5  ;;  %v534_v42 = vld [vmem:[%s750_s6] ss:$0 sm:$0xff]  ;;  %s381_s6 = sshll.u32 %s677_s4, 4  ;;  %s382_s6 = int_to_ptr.vmem [resolvable:$true] %s381_s6 }
  0x1e   :  { %337 = vmatpush.bf16.msra.mxu2 %v521_v18 }
  0x20   :  { %169 = vmatpush.bf16.msra.mxu0 %v503_v6 }
  0x21   :  { %254 = vmatpush.bf16.msra.mxu1 %v511_v7 }
  0x22   :  { %338 = vmatpush.bf16.msra.mxu2 %v520_v19 }
  0x24   :  { %170 = vmatpush.bf16.msra.mxu0 %v502_v8 }
  0x25   :  { %255 = vmatpush.bf16.msra.mxu1 %v510_v13 }
  0x26   :  { %339 = vmatpush.bf16.msra.mxu2 %v519_v20 }
  0x28   :  { %171 = vmatpush.bf16.msra.mxu0 %v501_v9 }
  0x29   :  { %256 = vmatpush.bf16.msra.mxu1 %v509_v14 }
  0x2a   :  { %340 = vmatpush.bf16.msra.mxu2 %v518_v29 }
  0x2c   :  { %172 = vmatpush.bf16.msra.mxu0 %v500_v10 }
  0x2d   :  { %257 = vmatpush.bf16.msra.mxu1 %v508_v15 }
  0x2e   :  { %341 = vmatpush.bf16.msra.mxu2 %v517_v30 }
  0x30   :  { %173 = vmatpush.bf16.msra.mxu0 %v499_v11 }
  0x31   :  { %258 = vmatpush.bf16.msra.mxu1 %v507_v16 }
  0x32   :  { %342 = vmatpush.bf16.msra.mxu2 %v516_v31 }
  0x33   :  { %174 = vmatmul.bf16.vlgmr.msra.gmra.mxu0 %v498_v12 }
  0x36   :  { %343 = vmatpush.bf16.msra.mxu2 %v515_v32 }
  0xb0   :  { %v175_v21 = vpop.f32.mrf.mxu0 }
  0xb1   :  { %v176_v23 = vadd.f32 %v532_v22, %v175_v21 }
  0xb3   :  { %v180_v26 = vmax.f32 %v176_v23, 0.0 }
  0xb8   :  { %v177_v24 = vpop.f32.mrf.mxu0 }
  0xb9   :  { %v178_v25 = vadd.f32 %v532_v22, %v177_v24 }
  0xbb   :  { %v181_v27 = vmax.f32 %v178_v25, 0.0 }
  0xbd   :  { %v182_v28 = vpack.c.bf16 %v181_v27, %v180_v26 }
  0xbf   :  { %259 = vmatmul.bf16.vlgmr.msra.gmra.mxu1 %v182_v28 }
 0x13c   :  { %v260_v33 = vpop.f32.mrf.mxu1 }
 0x13d   :  { %v261_v35 = vadd.f32 %v533_v34, %v260_v33 }
 0x13f   :  { %v265_v38 = vmax.f32 %v261_v35, 0.0 }
 0x144   :  { %v262_v36 = vpop.f32.mrf.mxu1 }
 0x145   :  { %v263_v37 = vadd.f32 %v533_v34, %v262_v36 }
 0x147   :  { %v266_v39 = vmax.f32 %v263_v37, 0.0 }
 0x149   :  { %v267_v40 = vpack.c.bf16 %v266_v39, %v265_v38 }
 0x14b   :  { %344 = vmatmul.bf16.vlgmr.msra.gmra.mxu2 %v267_v40 }
 0x1ce   :  { %v345_v44 = vpop.f32.mrf.mxu2 }
 0x1cf   :  { %v346_v45 = vadd.f32 %v534_v42, %v345_v44 }
 0x1d1   :  { %v350_v46 = vmax.f32 %v346_v45, 0.0 }
 0x1d3   :  { %v355_v47 = vsel %vm354_vm0, %v350_v46, -inf }
 0x1d4   :  { %357 = vmax.xlane.f32.xlu0 %v355_v47 }
 0x1d6   :  { %v347_v48 = vpop.f32.mrf.mxu2 }
 0x1d7   :  { %v348_v49 = vadd.f32 %v534_v42, %v347_v48 }
 0x1d9   :  { %v351_v50 = vmax.f32 %v348_v49, 0.0 }
 0x1db   :  { %v356_v51 = vsel %vm354_vm0, %v351_v50, -inf }
 0x1dc   :  { %359 = vmax.xlane.f32.xlu0 %v356_v51 }
 0x247   :  { %v358_v52 = vpop.xlane.xlu0 %357 }
 0x248   :  { %v361_v53 = vsub.f32 %v355_v47, %v358_v52 }
 0x24a   :  { %v363_v54 = vmul.f32 1.442695, %v361_v53 }
 0x24c   :  { %535 = vpow2.f32 %v363_v54 }
 0x24f   :  { %v360_v55 = vpop.xlane.xlu0 %359 }
 0x250   :  { %v362_v56 = vsub.f32 %v356_v51, %v360_v55 }
 0x252   :  { %v536_v57 = vpop.eup %535  ;;  %v365_v58 = vmul.f32 1.442695, %v362_v56 }
 0x253   :  { %367 = vadd.xlane.f32.xlu1 %v536_v57 }
 0x254   :  { %537 = vpow2.f32 %v365_v58 }
 0x25a   :  { %v538_v59 = vpop.eup %537 }
 0x25b   :  { %369 = vadd.xlane.f32.xlu1 %v538_v59 }
 0x2c6   :  { %v368_v60 = vpop.xlane.xlu1 %367 }
 0x2c7   :  { %539 = vrcp.f32 %v368_v60 }
 0x2cd   :  { %v540_v61 = vpop.eup %539 }
 0x2ce   :  { %v373_v62 = vmul.f32 %v540_v61, %v536_v57  ;;  %v370_v63 = vpop.xlane.xlu1 %369 }
 0x2cf   :  { %541 = vrcp.f32 %v370_v63 }
 0x2d0   :  { %375 = vst [vmem:[#allocation10] sm:$0xff] %v373_v62 }
 0x2d5   :  { %v542_v0 = vpop.eup %541 }
 0x2d6   :  { %v374_v1 = vmul.f32 %v542_v0, %v538_v59 }
 0x2d8   :  { %376 = vst [vmem:[#allocation10 + $0x8] sm:$0xff] %v374_v1 }
 0x2d9   :  { %389 = dma.vmem_to_hbm [thread:$0]  %s382_s6, 256, %s384_s26, [#allocation4], %s678_s27, %s678_s27, %s679_s28  }
 0x2da   :  { %669 = dma.done.wait [#allocation4], 256  }
 0x2db   :  { %670 = vsyncadd [#allocation4], 4294967040 }
 0x2dc   :  { %394 = vsyncpa [#allocation3], 1 }
 0x2dd   :  { %395 = vsyncpa [#allocation6], 1 }
 0x2de   :  { %396 = vsyncpa [#allocation9], 1 }
 0x2df   :  { %397 = vsyncpa [#allocation4], 1 }

</bundles_post_ra>
